<compile_context>
chip_gen: v6e
topology: v6e:2x2x1
jax: 0.10.0
libtpu: 0.0.40
codegen_flags: <defaults>
</compile_context>

<pallas_src>
import jax
import jax.numpy as jnp
from jax.experimental import pallas as pl
from jax.experimental.pallas import tpu as pltpu


# ----------------------------- fused Pallas kernel ---------------------------

def _channel_gate_kernel(x_ref, w1_ref, b1_ref, w2_ref, b2_ref, o_ref):
    """Per-image: avg/max pool -> shared MLP -> sigmoid gate -> x * gate."""
    x = x_ref[0]                                   # (C, HW), input dtype
    xf = x.astype(jnp.float32)

    # Global pooling over the spatial (lane) axis: one read of x, both stats.
    avg = jnp.mean(xf, axis=-1, keepdims=True)     # (C, 1)
    mx = jnp.max(xf, axis=-1, keepdims=True)       # (C, 1)

    w1 = w1_ref[...]                               # (hidden, C)
    b1 = b1_ref[...]                               # (hidden, 1)
    w2 = w2_ref[...]                               # (C, hidden)
    b2 = b2_ref[...]                               # (C, 1)

    def mlp(v):                                    # v: (C, 1) column vector
        h = jnp.dot(w1, v, preferred_element_type=jnp.float32) + b1
        h = jnp.maximum(h, 0.0)                    # ReLU
        return jnp.dot(w2, h, preferred_element_type=jnp.float32) + b2

    gate = jax.nn.sigmoid(mlp(avg) + mlp(mx))      # (C, 1), f32
    o_ref[0] = (xf * gate).astype(o_ref.dtype)     # broadcast across lanes


def _fused_call(x3, w1, b1, w2, b2):
    N, C, HW = x3.shape
    hidden = w1.shape[0]

    # Explicit scoped-VMEM budget: never below the default 32 MiB, grown when
    # the per-image block (double-buffered in + out) needs more, capped well
    # under v5e/v6e physical VMEM.
    block_bytes = C * HW * x3.dtype.itemsize
    vmem_bytes = int(min(100 * 2**20, max(32 * 2**20, 6 * block_bytes)))

    return pl.pallas_call(
        _channel_gate_kernel,
        out_shape=jax.ShapeDtypeStruct((N, C, HW), x3.dtype),
        grid=(N,),
        in_specs=[
            pl.BlockSpec((1, C, HW), lambda n: (n, 0, 0)),   # x (per image)
            pl.BlockSpec((hidden, C), lambda n: (0, 0)),     # w1
            pl.BlockSpec((hidden, 1), lambda n: (0, 0)),     # b1
            pl.BlockSpec((C, hidden), lambda n: (0, 0)),     # w2
            pl.BlockSpec((C, 1), lambda n: (0, 0)),          # b2
        ],
        out_specs=pl.BlockSpec((1, C, HW), lambda n: (n, 0, 0)),
        compiler_params=pltpu.CompilerParams(
            dimension_semantics=("parallel",),
            vmem_limit_bytes=vmem_bytes),
    )(x3, w1, b1, w2, b2)


# ------------------------------ model forward --------------------------------

@jax.jit
def channel_gate_forward(params, x_nchw):
    """ChannelGate.forward (pool_types=['avg','max']) on NCHW input."""
    N, C, H, W = x_nchw.shape
    x3 = x_nchw.reshape(N, C, H * W)               # free reshape, no transpose
    out = _fused_call(x3, params["w1"], params["b1"],
                      params["w2"], params["b2"])
    return out.reshape(N, C, H, W)


# ------------------------------- parameters ----------------------------------

def make_params(gate_channels, reduction_ratio=16, seed=0):
    """PyTorch-layout Linear weights/biases of the shared MLP."""
    hidden = gate_channels // reduction_ratio
    k1, k2, k3, k4 = jax.random.split(jax.random.PRNGKey(seed), 4)
    bound1 = 1.0 / (gate_channels ** 0.5)
    bound2 = 1.0 / (hidden ** 0.5)
    return {
        "w1": jax.random.uniform(k1, (hidden, gate_channels), jnp.float32,
                                 -bound1, bound1),
        "b1": jax.random.uniform(k2, (hidden,), jnp.float32, -bound1, bound1),
        "w2": jax.random.uniform(k3, (gate_channels, hidden), jnp.float32,
                                 -bound2, bound2),
        "b2": jax.random.uniform(k4, (gate_channels,), jnp.float32,
                                 -bound2, bound2),
    }


def prepare_params(pt_params):
    """Keep weights in PyTorch (out, in) layout; only reshape biases to
    column vectors once (offline). No padding / transposes needed."""
    return {
        "w1": pt_params["w1"],                     # (hidden, C)
        "b1": pt_params["b1"].reshape(-1, 1),      # (hidden, 1)
        "w2": pt_params["w2"],                     # (C, hidden)
        "b2": pt_params["b2"].reshape(-1, 1),      # (C, 1)
    }


# ---------------------------- pure-JAX reference ------------------------------

def channel_gate_ref(pt_params, x_nchw):
    """Reference mirroring the PyTorch module (f32, highest precision)."""
    x = x_nchw.astype(jnp.float32)
    avg = jnp.mean(x, axis=(2, 3))
    mx = jnp.max(x, axis=(2, 3))
    hi = jax.lax.Precision.HIGHEST

    def mlp(v):
        h = jnp.maximum(
            jnp.dot(v, pt_params["w1"].T, precision=hi) + pt_params["b1"], 0.0)
        return jnp.dot(h, pt_params["w2"].T, precision=hi) + pt_params["b2"]

    att = mlp(avg) + mlp(mx)
    return x * jax.nn.sigmoid(att)[:, :, None, None]


# ----------------------------------- main -------------------------------------

if __name__ == "__main__":
    N, C, H, W = 2, 128, 16, 16            # reduction_ratio=16 -> hidden = 8
    pt_params = make_params(C, reduction_ratio=16, seed=0)
    params = prepare_params(pt_params)
    x = jax.random.normal(jax.random.PRNGKey(0), (N, C, H, W), jnp.float32)

    out = jax.block_until_ready(channel_gate_forward(params, x))
    assert out.shape == (N, C, H, W)

    ref = jax.block_until_ready(channel_gate_ref(pt_params, x))
    err = float(jnp.max(jnp.abs(out - ref)))
    assert err < 2e-3, f"max abs error vs reference too large: {err}"
    print("KERNEL_OK")
</pallas_src>

<mosaic_0001>
module attributes {stable_mosaic.version = 11 : i64} {
  func.func @_channel_gate_kernel(%arg0: i32, %arg1: memref<1x128x256xf32, #tpu.memory_space<vmem>>, %arg2: memref<8x128xf32, #tpu.memory_space<vmem>>, %arg3: memref<8x1xf32, #tpu.memory_space<vmem>>, %arg4: memref<128x8xf32, #tpu.memory_space<vmem>>, %arg5: memref<128x1xf32, #tpu.memory_space<vmem>>, %arg6: memref<1x128x256xf32, #tpu.memory_space<vmem>>) attributes {dimension_semantics = [#tpu.dimension_semantics<parallel>], iteration_bounds = array<i64: 2>, scalar_prefetch = 0 : i64, scratch_operands = 0 : i64, tpu.core_type = #tpu.core_type<tc>, window_params = [{transform_indices = @transform_0, window_bounds = array<i64: 1, 128, 256>}, {pipeline_mode = #tpu.pipeline_mode<synchronous>, transform_indices = @transform_1, window_bounds = array<i64: 8, 128>}, {pipeline_mode = #tpu.pipeline_mode<synchronous>, transform_indices = @transform_2, window_bounds = array<i64: 8, 1>}, {pipeline_mode = #tpu.pipeline_mode<synchronous>, transform_indices = @transform_3, window_bounds = array<i64: 128, 8>}, {pipeline_mode = #tpu.pipeline_mode<synchronous>, transform_indices = @transform_4, window_bounds = array<i64: 128, 1>}, {transform_indices = @transform_5, window_bounds = array<i64: 1, 128, 256>}]} {
    %c0 = arith.constant 0 : index
    %c0_0 = arith.constant 0 : index
    %c0_1 = arith.constant 0 : index
    %0 = vector.load %arg1[%c0, %c0_0, %c0_1] : memref<1x128x256xf32, #tpu.memory_space<vmem>>, vector<1x128x256xf32>
    %1 = vector.shape_cast %0 : vector<1x128x256xf32> to vector<128x256xf32>
    %cst = arith.constant dense<0.000000e+00> : vector<128xf32>
    %2 = vector.multi_reduction <add>, %1, %cst [1] : vector<128x256xf32> to vector<128xf32>
    %3 = vector.shape_cast %2 : vector<128xf32> to vector<128x1xf32>
    %cst_2 = arith.constant 2.560000e+02 : f32
    %4 = vector.broadcast %cst_2 : f32 to vector<128x1xf32>
    %5 = arith.divf %3, %4 : vector<128x1xf32>
    %cst_3 = arith.constant dense<0xFF800000> : vector<128xf32>
    %6 = vector.multi_reduction <maximumf>, %1, %cst_3 [1] : vector<128x256xf32> to vector<128xf32>
    %7 = vector.shape_cast %6 : vector<128xf32> to vector<128x1xf32>
    %c0_4 = arith.constant 0 : index
    %c0_5 = arith.constant 0 : index
    %8 = vector.load %arg2[%c0_4, %c0_5] : memref<8x128xf32, #tpu.memory_space<vmem>>, vector<8x128xf32>
    %c0_6 = arith.constant 0 : index
    %c0_7 = arith.constant 0 : index
    %9 = vector.load %arg3[%c0_6, %c0_7] : memref<8x1xf32, #tpu.memory_space<vmem>>, vector<8x1xf32>
    %c0_8 = arith.constant 0 : index
    %c0_9 = arith.constant 0 : index
    %10 = vector.load %arg4[%c0_8, %c0_9] : memref<128x8xf32, #tpu.memory_space<vmem>>, vector<128x8xf32>
    %c0_10 = arith.constant 0 : index
    %c0_11 = arith.constant 0 : index
    %11 = vector.load %arg5[%c0_10, %c0_11] : memref<128x1xf32, #tpu.memory_space<vmem>>, vector<128x1xf32>
    %cst_12 = arith.constant dense<0.000000e+00> : vector<8x1xf32>
    %12 = tpu.matmul %8, %5, %cst_12 {dimension_numbers = #tpu.dot_dimension_numbers<[1], [0], [0], [1], [0, 0, 1, 1], [], []>} : vector<8x128xf32>, vector<128x1xf32>, vector<8x1xf32> -> vector<8x1xf32>
    %13 = arith.addf %12, %9 : vector<8x1xf32>
    %cst_13 = arith.constant 0.000000e+00 : f32
    %14 = vector.broadcast %cst_13 : f32 to vector<8x1xf32>
    %15 = arith.maximumf %13, %14 : vector<8x1xf32>
    %cst_14 = arith.constant dense<0.000000e+00> : vector<128x1xf32>
    %16 = tpu.matmul %10, %15, %cst_14 {dimension_numbers = #tpu.dot_dimension_numbers<[1], [0], [0], [1], [0, 0, 1, 1], [], []>} : vector<128x8xf32>, vector<8x1xf32>, vector<128x1xf32> -> vector<128x1xf32>
    %17 = arith.addf %16, %11 : vector<128x1xf32>
    %cst_15 = arith.constant dense<0.000000e+00> : vector<8x1xf32>
    %18 = tpu.matmul %8, %7, %cst_15 {dimension_numbers = #tpu.dot_dimension_numbers<[1], [0], [0], [1], [0, 0, 1, 1], [], []>} : vector<8x128xf32>, vector<128x1xf32>, vector<8x1xf32> -> vector<8x1xf32>
    %19 = arith.addf %18, %9 : vector<8x1xf32>
    %cst_16 = arith.constant 0.000000e+00 : f32
    %20 = vector.broadcast %cst_16 : f32 to vector<8x1xf32>
    %21 = arith.maximumf %19, %20 : vector<8x1xf32>
    %cst_17 = arith.constant dense<0.000000e+00> : vector<128x1xf32>
    %22 = tpu.matmul %10, %21, %cst_17 {dimension_numbers = #tpu.dot_dimension_numbers<[1], [0], [0], [1], [0, 0, 1, 1], [], []>} : vector<128x8xf32>, vector<8x1xf32>, vector<128x1xf32> -> vector<128x1xf32>
    %23 = arith.addf %22, %11 : vector<128x1xf32>
    %24 = arith.addf %17, %23 : vector<128x1xf32>
    %25 = arith.negf %24 : vector<128x1xf32>
    %26 = math.exp %25 : vector<128x1xf32>
    %cst_18 = arith.constant 1.000000e+00 : f32
    %27 = vector.broadcast %cst_18 : f32 to vector<128x1xf32>
    %28 = arith.addf %27, %26 : vector<128x1xf32>
    %29 = arith.divf %27, %28 : vector<128x1xf32>
    %30 = vector.broadcast %29 : vector<128x1xf32> to vector<128x256xf32>
    %31 = arith.mulf %1, %30 : vector<128x256xf32>
    %c0_19 = arith.constant 0 : index
    %c0_20 = arith.constant 0 : index
    %c0_21 = arith.constant 0 : index
    %32 = vector.load %arg6[%c0_19, %c0_20, %c0_21] : memref<1x128x256xf32, #tpu.memory_space<vmem>>, vector<1x128x256xf32>
    %33 = vector.shape_cast %32 : vector<1x128x256xf32> to vector<128x256xf32>
    %34 = vector.shape_cast %31 : vector<128x256xf32> to vector<1x128x256xf32>
    tpu.vector_store %arg6[%c0_19, %c0_20, %c0_21], %34 {strides = array<i32>} : memref<1x128x256xf32, #tpu.memory_space<vmem>>, vector<1x128x256xf32>,
    return
  }
  func.func @transform_0(%arg0: i32) -> (i32, i32, i32) {
    %c0_i32 = arith.constant 0 : i32
    %c0_i32_0 = arith.constant 0 : i32
    %c0_i32_1 = arith.constant 0 : i32
    return %arg0, %c0_i32, %c0_i32_0 : i32, i32, i32
  }
  func.func @transform_1(%arg0: i32) -> (i32, i32) {
    %c0_i32 = arith.constant 0 : i32
    %c0_i32_0 = arith.constant 0 : i32
    %c0_i32_1 = arith.constant 0 : i32
    return %c0_i32, %c0_i32_0 : i32, i32
  }
  func.func @transform_2(%arg0: i32) -> (i32, i32) {
    %c0_i32 = arith.constant 0 : i32
    %c0_i32_0 = arith.constant 0 : i32
    %c0_i32_1 = arith.constant 0 : i32
    return %c0_i32, %c0_i32_0 : i32, i32
  }
  func.func @transform_3(%arg0: i32) -> (i32, i32) {
    %c0_i32 = arith.constant 0 : i32
    %c0_i32_0 = arith.constant 0 : i32
    %c0_i32_1 = arith.constant 0 : i32
    return %c0_i32, %c0_i32_0 : i32, i32
  }
  func.func @transform_4(%arg0: i32) -> (i32, i32) {
    %c0_i32 = arith.constant 0 : i32
    %c0_i32_0 = arith.constant 0 : i32
    %c0_i32_1 = arith.constant 0 : i32
    return %c0_i32, %c0_i32_0 : i32, i32
  }
  func.func @transform_5(%arg0: i32) -> (i32, i32, i32) {
    %c0_i32 = arith.constant 0 : i32
    %c0_i32_0 = arith.constant 0 : i32
    %c0_i32_1 = arith.constant 0 : i32
    return %arg0, %c0_i32, %c0_i32_0 : i32, i32, i32
  }
}

</mosaic_0001>

<bundles_post_ra>
// kernel: channel_gate_forward.1
= control target key start
LH: loop header
LB: loop body
LE: loop exit
PB: predicated region body
PF: predicated region fallthrough
CT: control target
= control target key end

     0   :  { %s1579_s18 = smov 0   ;;  %s2045_s0 = inlined_call_operand.vmem [shape: f32[2,128,256], index: 0, kind: input, shape index: {}]   ;;  %s2046_s1 = inlined_call_operand.vmem [shape: f32[8,128], index: 1, kind: input, shape index: {}]   ;;  %s2047_s2 = inlined_call_operand.vmem [shape: f32[8,1], index: 2, kind: input, shape index: {}]   ;;  %s2048_s3 = inlined_call_operand.vmem [shape: f32[128,8], index: 3, kind: input, shape index: {}]   ;;  %s2049_s4 = inlined_call_operand.vmem [shape: f32[128,1], index: 4, kind: input, shape index: {}]   ;;  %s2050_s5 = inlined_call_operand.vmem [shape: f32[2,128,256], index: 5, kind: output, shape index: {}]  }
   0x1 LB: > { %s1196_s19 = sadd.s32 4294967295, %s1544_s18   ;;  %p1200_p0 = scmp.ge.s32.totalorder %s1544_s18, 1  ;;  %s1544_s18 = sphi %s1579_s18, %s15_s18  }
   0x2   : > { %p187_p1 = scmp.lt.s32.totalorder %s1544_s18, 3 }
   0x4   : > { %p188_p2 = pnand %p1200_p0, %p187_p1 }
   0x6   : > { %191 = sbr.rel (%p188_p2) target bundleno = 1018 (0x3fa), region = 40 }
   0xb   : > { %p215_p3 = scmp.lt.s32.totalorder %s1196_s19, 1  ;;  %v1546_v28 = vmov 0.0   ;;  %vm1547_vm0 = vmmov 0   ;;  %vm475_vm1 = vcmask 64512  }
   0xc   : > { %1325 = vmatprep.subr.mxu0 %v1546_v28  ;;  %1357 = vmatprep.mubr.msk.f32.mxu0 %vm1547_vm0, %v1546_v28 }
   0xd   : > { %s2055_s19 = smov (!%p215_p3, %s1196_s19), 1 }
   0xe   : > { %s1255_s20 = sshll.u32 %s2055_s19, 8 }
   0xf   : > { %s1595_s23 = scalar_lea.vmem %s2045_s0, %s1255_s20  ;;  %s1976_s6 = scalar_lea.vmem %s2050_s5, %s1255_s20 }
  0x10   : > { %v1598_v0 = vld [vmem:[%s1595_s23 + $0xf0] sm:$0xff]  ;;  %v1601_v1 = vld [vmem:[%s1595_s23 + $0xf8] sm:$0xff]  ;;  %v1604_v2 = vld [vmem:[%s1595_s23 + $0xe0] sm:$0xff] }
  0x11   : > { %v302_v3 = vadd.f32 %v1601_v1, %v1598_v0  ;;  %v1609_v4 = vld [vmem:[%s1595_s23 + $0xe8] sm:$0xff]  ;;  %v1612_v5 = vld [vmem:[%s1595_s23 + $0xd0] sm:$0xff]  ;;  %v1615_v6 = vld [vmem:[%s1595_s23 + $0xd8] sm:$0xff]  ;;  %v367_v49 = vmax.f32 %v1598_v0, %v1601_v1 }
  0x12   : > { %v296_v7 = vadd.f32 %v1615_v6, %v1612_v5  ;;  %v1620_v8 = vld [vmem:[%s1595_s23 + $0xc0] sm:$0xff]  ;;  %v1623_v9 = vld [vmem:[%s1595_s23 + $0xc8] sm:$0xff]  ;;  %v299_v10 = vadd.f32 %v1609_v4, %v1604_v2  ;;  %v1630_v12 = vld [vmem:[%s1595_s23 + $0xb0] sm:$0xff]  ;;  %v364_v50 = vmax.f32 %v1604_v2, %v1609_v4  ;;  %v361_v51 = vmax.f32 %v1612_v5, %v1615_v6 }
  0x13   : > { %303 = vadd.xlane.f32.xlu0 %v302_v3  ;;  %v293_v11 = vadd.f32 %v1623_v9, %v1620_v8  ;;  %v1633_v13 = vld [vmem:[%s1595_s23 + $0xb8] sm:$0xff]  ;;  %v1636_v14 = vld [vmem:[%s1595_s23 + $0xa0] sm:$0xff]  ;;  %v1639_v15 = vld [vmem:[%s1595_s23 + $0xa8] sm:$0xff]  ;;  %v358_v52 = vmax.f32 %v1620_v8, %v1623_v9 }
  0x14   : > { %297 = vadd.xlane.f32.xlu1 %v296_v7  ;;  %v290_v16 = vadd.f32 %v1633_v13, %v1630_v12  ;;  %v287_v17 = vadd.f32 %v1639_v15, %v1636_v14  ;;  %v1646_v18 = vld [vmem:[%s1595_s23 + $0x90] sm:$0xff]  ;;  %v1649_v19 = vld [vmem:[%s1595_s23 + $0x98] sm:$0xff]  ;;  %v241_v20 = vld [vmem:[%s1595_s23 + $0x80] sm:$0xff]  ;;  %v355_v53 = vmax.f32 %v1630_v12, %v1633_v13  ;;  %v352_v54 = vmax.f32 %v1636_v14, %v1639_v15 }
  0x15   : > { %v242_v21 = vld [vmem:[%s1595_s23 + $0x88] sm:$0xff]  ;;  %v284_v22 = vadd.f32 %v1649_v19, %v1646_v18  ;;  %v239_v24 = vld [vmem:[%s1595_s23 + $0x70] sm:$0xff]  ;;  %v240_v25 = vld [vmem:[%s1595_s23 + $0x78] sm:$0xff]  ;;  %v349_v55 = vmax.f32 %v1646_v18, %v1649_v19 }
  0x16   : > { %v281_v23 = vadd.f32 %v242_v21, %v241_v20  ;;  %v237_v26 = vld [vmem:[%s1595_s23 + $0x60] sm:$0xff]  ;;  %v238_v27 = vld [vmem:[%s1595_s23 + $0x68] sm:$0xff]  ;;  %v278_v29 = vadd.f32 %v240_v25, %v239_v24  ;;  %v1661_v31 = vld [vmem:[%s1595_s23 + $0x50] sm:$0xff]  ;;  %v346_v56 = vmax.f32 %v241_v20, %v242_v21  ;;  %v343_v57 = vmax.f32 %v239_v24, %v240_v25 }
  0x17   : > { %300 = vadd.xlane.f32.xlu0 %v299_v10  ;;  %v275_v30 = vadd.f32 %v238_v27, %v237_v26  ;;  %v1664_v32 = vld [vmem:[%s1595_s23 + $0x58] sm:$0xff]  ;;  %v1667_v33 = vld [vmem:[%s1595_s23 + $0x40] sm:$0xff]  ;;  %v1670_v34 = vld [vmem:[%s1595_s23 + $0x48] sm:$0xff]  ;;  %v340_v58 = vmax.f32 %v237_v26, %v238_v27 }
  0x18   : > { %294 = vadd.xlane.f32.xlu1 %v293_v11  ;;  %2052 = vst [vmem:[#allocation2_spill] sm:$0xff] %v1670_v34  ;;  %v272_v35 = vadd.f32 %v1664_v32, %v1661_v31  ;;  %v269_v36 = vadd.f32 %v1670_v34, %v1667_v33  ;;  %v1677_v37 = vld [vmem:[%s1595_s23 + $0x30] sm:$0xff]  ;;  %v1680_v38 = vld [vmem:[%s1595_s23 + $0x38] sm:$0xff]  ;;  %v1683_v39 = vld [vmem:[%s1595_s23 + $0x20] sm:$0xff]  ;;  %v337_v59 = vmax.f32 %v1661_v31, %v1664_v32 }
  0x19   : > { %v1686_v40 = vld [vmem:[%s1595_s23 + $0x28] sm:$0xff]  ;;  %v266_v41 = vadd.f32 %v1680_v38, %v1677_v37  ;;  %v1693_v43 = vld [vmem:[%s1595_s23 + $0x10] sm:$0xff]  ;;  %v1696_v44 = vld [vmem:[%s1595_s23 + $0x18] sm:$0xff]  ;;  %v334_v60 = vmax.f32 %v1667_v33, %v1670_v34  ;;  %v331_v61 = vmax.f32 %v1677_v37, %v1680_v38 }
  0x1a   : > { %v263_v42 = vadd.f32 %v1686_v40, %v1683_v39  ;;  %v1699_v45 = vld [vmem:[%s1595_s23] sm:$0xff]  ;;  %v1702_v46 = vld [vmem:[%s1595_s23 + $0x8] sm:$0xff]  ;;  %v260_v47 = vadd.f32 %v1696_v44, %v1693_v43  ;;  %v328_v62 = vmax.f32 %v1683_v39, %v1686_v40  ;;  %v325_v63 = vmax.f32 %v1693_v43, %v1696_v44 }
  0x1b   : > { %291 = vadd.xlane.f32.xlu0 %v290_v16  ;;  %v257_v48 = vadd.f32 %v1702_v46, %v1699_v45  ;;  %v322_v0 = vmax.f32 %v1699_v45, %v1702_v46 }
  0x1c   : > { %288 = vadd.xlane.f32.xlu1 %v287_v17 }
  0x1f   : > { %285 = vadd.xlane.f32.xlu0 %v284_v22 }
  0x20   : > { %282 = vadd.xlane.f32.xlu1 %v281_v23 }
  0x23   : > { %279 = vadd.xlane.f32.xlu0 %v278_v29 }
  0x24   : > { %276 = vadd.xlane.f32.xlu1 %v275_v30 }
  0x27   : > { %273 = vadd.xlane.f32.xlu0 %v272_v35 }
  0x28   : > { %270 = vadd.xlane.f32.xlu1 %v269_v36 }
  0x2b   : > { %267 = vadd.xlane.f32.xlu0 %v266_v41 }
  0x2c   : > { %264 = vadd.xlane.f32.xlu1 %v263_v42 }
  0x2f   : > { %261 = vadd.xlane.f32.xlu0 %v260_v47 }
  0x30   : > { %258 = vadd.xlane.f32.xlu1 %v257_v48 }
  0x33   : > { %368 = vmax.xlane.f32.xlu0 %v367_v49 }
  0x34   : > { %365 = vmax.xlane.f32.xlu1 %v364_v50 }
  0x37   : > { %362 = vmax.xlane.f32.xlu0 %v361_v51 }
  0x38   : > { %359 = vmax.xlane.f32.xlu1 %v358_v52 }
  0x3b   : > { %356 = vmax.xlane.f32.xlu0 %v355_v53 }
  0x3c   : > { %353 = vmax.xlane.f32.xlu1 %v352_v54  ;;  %v1753_v54 = vld [vmem:[%s2046_s1] sm:$0xff] }
  0x3f   : > { %350 = vmax.xlane.f32.xlu0 %v349_v55  ;;  %v372_v55 = vld [vmem:[%s2048_s3] sm:$0xff] }
  0x40   : > { %347 = vmax.xlane.f32.xlu1 %v346_v56  ;;  %1362 = vmatprep.mubr.msk.f32.mxu1 %vm475_vm1, %v372_v55 }
  0x43   : > { %344 = vmax.xlane.f32.xlu0 %v343_v57 }
  0x44   : > { %341 = vmax.xlane.f32.xlu1 %v340_v58 }
  0x47   : > { %338 = vmax.xlane.f32.xlu0 %v337_v59  ;;  %v1765_v59 = vld [vmem:[%s2047_s2] sm:$0xff] }
  0x48   : > { %335 = vmax.xlane.f32.xlu1 %v334_v60 }
  0x4b   : > { %332 = vmax.xlane.f32.xlu0 %v331_v61 }
  0x4c   : > { %329 = vmax.xlane.f32.xlu1 %v328_v62 }
  0x4f   : > { %326 = vmax.xlane.f32.xlu0 %v325_v63 }
  0x50   : > { %323 = vmax.xlane.f32.xlu1 %v322_v0 }
  0x9c   : > { %v304_v1 = vpop.xlane.xlu0 %303 }
  0x9d   : > { %v321_v2 = vmul.f32 0.00390625, %v304_v1  ;;  %v298_v3 = vpop.xlane.xlu1 %297 }
  0x9e   : > { %v319_v9 = vmul.f32 0.00390625, %v298_v3  ;;  %v1776_v3 = vld [vmem:[%s2048_s3 + $0x10] sm:$0xff] }
  0x9f   : > { %1326 = vmatpush3.msra.mxu0 %v321_v2  ;;  %v1771_v2 = vld [vmem:[%s2048_s3 + $0x8] sm:$0xff] }
  0xa0   : > { %v301_v4 = vpop.xlane.xlu0 %300  ;;  %1327 = vmatprep.subr.mxu0 %v1546_v28 }
  0xa1   : > { %v320_v7 = vmul.f32 0.00390625, %v301_v4  ;;  %v295_v8 = vpop.xlane.xlu1 %294 }
  0xa2   : > { %v318_v10 = vmul.f32 0.00390625, %v295_v8  ;;  %v1792_v8 = vld [vmem:[%s2048_s3 + $0x20] sm:$0xff] }
  0xa3   : > { %1328 = vmatpush3.msra.mxu0 %v320_v7  ;;  %v1786_v7 = vld [vmem:[%s2048_s3 + $0x18] sm:$0xff] }
  0xa4   : > { %1329 = vmatprep.subr.mxu0 %v1546_v28  ;;  %v292_v11 = vpop.xlane.xlu0 %291 }
  0xa5   : > { %1330 = vmatpush3.msra.mxu0 %v319_v9  ;;  %v317_v16 = vmul.f32 0.00390625, %v292_v11  ;;  %v289_v17 = vpop.xlane.xlu1 %288  ;;  %v1802_v11 = vld [vmem:[%s2048_s3 + $0x28] sm:$0xff] }
  0xa6   : > { %1331 = vmatprep.subr.mxu0 %v1546_v28  ;;  %v316_v20 = vmul.f32 0.00390625, %v289_v17 }
  0xa7   : > { %1332 = vmatpush3.msra.mxu0 %v318_v10 }
  0xa8   : > { %1333 = vmatprep.subr.mxu0 %v1546_v28  ;;  %v286_v21 = vpop.xlane.xlu0 %285 }
  0xa9   : > { %1334 = vmatpush3.msra.mxu0 %v317_v16  ;;  %v315_v22 = vmul.f32 0.00390625, %v286_v21  ;;  %v283_v23 = vpop.xlane.xlu1 %282  ;;  %v1808_v16 = vld [vmem:[%s2048_s3 + $0x30] sm:$0xff]  ;;  %v1824_v21 = vld [vmem:[%s2048_s3 + $0x40] sm:$0xff] }
  0xaa   : > { %1335 = vmatprep.subr.mxu0 %v1546_v28  ;;  %v314_v24 = vmul.f32 0.00390625, %v283_v23  ;;  %v1834_v23 = vld [vmem:[%s2048_s3 + $0x48] sm:$0xff] }
  0xab   : > { %1336 = vmatpush3.msra.mxu0 %v316_v20  ;;  %v1818_v20 = vld [vmem:[%s2048_s3 + $0x38] sm:$0xff] }
  0xac   : > { %1337 = vmatprep.subr.mxu0 %v1546_v28  ;;  %v280_v25 = vpop.xlane.xlu0 %279 }
  0xad   : > { %1338 = vmatpush3.msra.mxu0 %v315_v22  ;;  %v313_v26 = vmul.f32 0.00390625, %v280_v25  ;;  %v277_v27 = vpop.xlane.xlu1 %276 }
  0xae   : > { %1339 = vmatprep.subr.mxu0 %v1546_v28  ;;  %v312_v29 = vmul.f32 0.00390625, %v277_v27  ;;  %v383_v27 = vld [vmem:[%s2048_s3 + $0x58] sm:$0xff] }
  0xaf   : > { %1340 = vmatpush3.msra.mxu0 %v314_v24  ;;  %v382_v24 = vld [vmem:[%s2048_s3 + $0x50] sm:$0xff] }
  0xb0   : > { %1341 = vmatprep.subr.mxu0 %v1546_v28  ;;  %v274_v30 = vpop.xlane.xlu0 %273 }
  0xb1   : > { %1342 = vmatpush3.msra.mxu0 %v313_v26  ;;  %v311_v35 = vmul.f32 0.00390625, %v274_v30  ;;  %v271_v36 = vpop.xlane.xlu1 %270 }
  0xb2   : > { %1343 = vmatprep.subr.mxu0 %v1546_v28  ;;  %v310_v41 = vmul.f32 0.00390625, %v271_v36 }
  0xb3   : > { %1344 = vmatpush3.msra.mxu0 %v312_v29  ;;  %v384_v29 = vld [vmem:[%s2048_s3 + $0x60] sm:$0xff] }
  0xb4   : > { %1345 = vmatprep.subr.mxu0 %v1546_v28  ;;  %v268_v42 = vpop.xlane.xlu0 %267 }
  0xb5   : > { %1346 = vmatpush3.msra.mxu0 %v311_v35  ;;  %v309_v47 = vmul.f32 0.00390625, %v268_v42  ;;  %v265_v48 = vpop.xlane.xlu1 %264  ;;  %v385_v35 = vld [vmem:[%s2048_s3 + $0x68] sm:$0xff]  ;;  %v387_v42 = vld [vmem:[%s2048_s3 + $0x78] sm:$0xff] }
  0xb6   : > { %1347 = vmatprep.subr.mxu0 %v1546_v28  ;;  %v308_v49 = vmul.f32 0.00390625, %v265_v48 }
  0xb7   : > { %1348 = vmatpush3.msra.mxu0 %v310_v41  ;;  %v386_v41 = vld [vmem:[%s2048_s3 + $0x70] sm:$0xff] }
  0xb8   : > { %1349 = vmatprep.subr.mxu0 %v1546_v28  ;;  %v262_v50 = vpop.xlane.xlu0 %261 }
  0xb9   : > { %1350 = vmatpush3.msra.mxu0 %v309_v47  ;;  %v307_v51 = vmul.f32 0.00390625, %v262_v50  ;;  %v259_v52 = vpop.xlane.xlu1 %258 }
  0xba   : > { %1351 = vmatprep.subr.mxu0 %v1546_v28  ;;  %v306_v53 = vmul.f32 0.00390625, %v259_v52 }
  0xbb   : > { %1352 = vmatpush3.msra.mxu0 %v308_v49 }
  0xbc   : > { %1353 = vmatprep.subr.mxu0 %v1546_v28  ;;  %v369_v56 = vpop.xlane.xlu0 %368 }
  0xbd   : > { %1354 = vmatpush3.msra.mxu0 %v307_v51  ;;  %v366_v57 = vpop.xlane.xlu1 %365 }
  0xbe   : > { %1355 = vmatprep.subr.mxu0 %v1546_v28 }
  0xbf   : > { %1356 = vmatpush3.msra.mxu0 %v306_v53 }
  0xc0   : > { %1358 = vmatmul.mubr.f32.vlgmr.msra.gmra.mxu0 %v1753_v54  ;;  %v363_v58 = vpop.xlane.xlu0 %362 }
  0xc1   : > { %1423 = vmatprep.mubr.msk.f32.mxu0 %vm475_vm1, %v372_v55  ;;  %v360_v60 = vpop.xlane.xlu1 %359 }
  0xc4   : > { %v357_v1 = vpop.xlane.xlu0 %356 }
  0xc5   : > { %v354_v4 = vpop.xlane.xlu1 %353 }
  0xc8   : > { %v351_v9 = vpop.xlane.xlu0 %350 }
  0xc9   : > { %v348_v10 = vpop.xlane.xlu1 %347 }
  0xcc   : > { %v345_v17 = vpop.xlane.xlu0 %344 }
  0xcd   : > { %v342_v22 = vpop.xlane.xlu1 %341 }
  0xd0   : > { %v339_v25 = vpop.xlane.xlu0 %338 }
  0xd1   : > { %v336_v26 = vpop.xlane.xlu1 %335 }
  0xd4   : > { %v333_v30 = vpop.xlane.xlu0 %332 }
  0xd5   : > { %v330_v36 = vpop.xlane.xlu1 %329 }
  0xd8   : > { %v327_v47 = vpop.xlane.xlu0 %326 }
  0xd9   : > { %v324_v48 = vpop.xlane.xlu1 %323 }
 0x180   : > { %v470_v61 = vpop.f32.mrf.mxu0 }
 0x181   : > { %v471_v62 = vadd.f32 %v470_v61, %v1765_v59 }
 0x182   : > { %v1359_v63 = vpop.f32.mrf.mxu0 }
 0x183   : > { %v474_v0 = vmax.f32 %v471_v62, 0.0 }
 0x185   : > { %1360 = vmatprep.subr.mxu1 %v474_v0 }
 0x186   : > { %1361 = vmatpush3.msra.mxu1 %v474_v0 }
 0x187   : > { %1363 = vmatmul.mubr.msk.f32.vlgmr.msra.gmra.mxu1 %vm475_vm1, %v1771_v2  ;;  %1386 = vmatprep.subr.mxu1 %v1546_v28 }
 0x188   : > { %1387 = vmatpush3.msra.mxu1 %v369_v56  ;;  %1365 = vmatprep.mubr.msk.f32.mxu1 %vm475_vm1, %v1776_v3 }
 0x189   : > { %1388 = vmatprep.subr.mxu1 %v1546_v28 }
 0x18a   : > { %1389 = vmatpush3.msra.mxu1 %v366_v57 }
 0x18b   : > { %1366 = vmatmul.mubr.msk.f32.gmra.mxu1 %vm475_vm1, %v1786_v7  ;;  %1390 = vmatprep.subr.mxu1 %v1546_v28 }
 0x18c   : > { %1391 = vmatpush3.msra.mxu1 %v363_v58  ;;  %1368 = vmatprep.mubr.msk.f32.mxu1 %vm475_vm1, %v1792_v8 }
 0x18d   : > { %1392 = vmatprep.subr.mxu1 %v1546_v28 }
 0x18e   : > { %1393 = vmatpush3.msra.mxu1 %v360_v60 }
 0x18f   : > { %1369 = vmatmul.mubr.msk.f32.gmra.mxu1 %vm475_vm1, %v1802_v11  ;;  %1394 = vmatprep.subr.mxu1 %v1546_v28 }
 0x190   : > { %1395 = vmatpush3.msra.mxu1 %v357_v1  ;;  %1371 = vmatprep.mubr.msk.f32.mxu1 %vm475_vm1, %v1808_v16 }
 0x191   : > { %1396 = vmatprep.subr.mxu1 %v1546_v28 }
 0x192   : > { %1397 = vmatpush3.msra.mxu1 %v354_v4 }
 0x193   : > { %1372 = vmatmul.mubr.msk.f32.gmra.mxu1 %vm475_vm1, %v1818_v20  ;;  %1398 = vmatprep.subr.mxu1 %v1546_v28 }
 0x194   : > { %1399 = vmatpush3.msra.mxu1 %v351_v9  ;;  %1374 = vmatprep.mubr.msk.f32.mxu1 %vm475_vm1, %v1824_v21 }
 0x195   : > { %1400 = vmatprep.subr.mxu1 %v1546_v28 }
 0x196   : > { %1401 = vmatpush3.msra.mxu1 %v348_v10 }
 0x197   : > { %1375 = vmatmul.mubr.msk.f32.gmra.mxu1 %vm475_vm1, %v1834_v23  ;;  %1402 = vmatprep.subr.mxu1 %v1546_v28 }
 0x198   : > { %1403 = vmatpush3.msra.mxu1 %v345_v17  ;;  %1377 = vmatprep.mubr.msk.f32.mxu1 %vm475_vm1, %v382_v24 }
 0x199   : > { %1404 = vmatprep.subr.mxu1 %v1546_v28 }
 0x19a   : > { %1405 = vmatpush3.msra.mxu1 %v342_v22 }
 0x19b   : > { %1378 = vmatmul.mubr.msk.f32.gmra.mxu1 %vm475_vm1, %v383_v27  ;;  %1406 = vmatprep.subr.mxu1 %v1546_v28 }
 0x19c   : > { %1407 = vmatpush3.msra.mxu1 %v339_v25  ;;  %1380 = vmatprep.mubr.msk.f32.mxu1 %vm475_vm1, %v384_v29 }
 0x19d   : > { %1408 = vmatprep.subr.mxu1 %v1546_v28 }
 0x19e   : > { %1409 = vmatpush3.msra.mxu1 %v336_v26 }
 0x19f   : > { %1381 = vmatmul.mubr.msk.f32.gmra.mxu1 %vm475_vm1, %v385_v35  ;;  %1410 = vmatprep.subr.mxu1 %v1546_v28 }
 0x1a0   : > { %1411 = vmatpush3.msra.mxu1 %v333_v30  ;;  %1383 = vmatprep.mubr.msk.f32.mxu1 %vm475_vm1, %v386_v41  ;;  %v401_v30 = vld [vmem:[%s2049_s4 + $0x68] sm:$0xff] }
 0x1a1   : > { %1412 = vmatprep.subr.mxu1 %v1546_v28 }
 0x1a2   : > { %1413 = vmatpush3.msra.mxu1 %v330_v36 }
 0x1a3   : > { %1384 = vmatmul.mubr.msk.f32.gmra.mxu1 %vm475_vm1, %v387_v42  ;;  %1414 = vmatprep.subr.mxu1 %v1546_v28 }
 0x1a4   : > { %1415 = vmatpush3.msra.mxu1 %v327_v47  ;;  %1418 = vmatprep.mubr.msk.f32.mxu1 %vm1547_vm0, %v1546_v28 }
 0x1a5   : > { %1416 = vmatprep.subr.mxu1 %v1546_v28 }
 0x1a6   : > { %1417 = vmatpush3.msra.mxu1 %v324_v48 }
 0x1a7   : > { %1419 = vmatmul.mubr.f32.vlgmr.msra.gmra.mxu1 %v1753_v54 }
 0x1a8   : > { %1438 = vmatprep.mubr.msk.f32.mxu1 %vm475_vm1, %v382_v24 }
 0x247   : > { %v1364_v49 = vpop.f32.mrf.mxu1 }
 0x249   : > { %v590_v50 = vpop.f32.mrf.mxu1 }
 0x24b   : > { %v1367_v51 = vpop.f32.mrf.mxu1 }
 0x24d   : > { %v600_v52 = vpop.f32.mrf.mxu1 }
 0x24f   : > { %v1875_v53 = vpop.f32.mrf.mxu1 }
 0x251   : > { %v1877_v55 = vpop.f32.mrf.mxu1 }
 0x253   : > { %v1879_v56 = vpop.f32.mrf.mxu1 }
 0x255   : > { %v1881_v57 = vpop.f32.mrf.mxu1 }
 0x257   : > { %v1883_v58 = vpop.f32.mrf.mxu1 }
 0x259   : > { %v1885_v28 = vpop.f32.mrf.mxu1 }
 0x25b   : > { %v1379_v60 = vpop.f32.mrf.mxu1 }
 0x25d   : > { %v640_v54 = vpop.f32.mrf.mxu1 }
 0x25f   : > { %v1382_v61 = vpop.f32.mrf.mxu1 }
 0x261   : > { %v650_v62 = vpop.f32.mrf.mxu1 }
 0x263   : > { %v1887_v63 = vpop.f32.mrf.mxu1 }
 0x265   : > { %v1889_v0 = vpop.f32.mrf.mxu1 }
 0x267   : > { %v735_v1 = vpop.f32.mrf.mxu1 }
 0x268   : > { %v736_v4 = vadd.f32 %v735_v1, %v1765_v59  ;;  %v1548_v59 = vmov 0  }
 0x269   : > { %v1420_v9 = vpop.f32.mrf.mxu1  ;;  %1461 = vset.pattern.permute.xlu0 %v1548_v59  ;;  %1460 = vset.pattern.permute.xlu1 %v1548_v59 }
 0x26a   : > { %v739_v10 = vmax.f32 %v736_v4, 0.0 }
 0x26c   : > { %1421 = vmatprep.subr.mxu0 %v739_v10  ;;  %1447 = vmatprep.subr.mxu1 %v739_v10 }
 0x26d   : > { %1422 = vmatpush3.msra.mxu0 %v739_v10  ;;  %1448 = vmatpush3.msra.mxu1 %v739_v10  ;;  %v656_v10 = vadd.f32 %v1382_v61, %v401_v30 }
 0x26e   : > { %1424 = vmatmul.mubr.msk.f32.vlgmr.msra.gmra.mxu0 %vm475_vm1, %v1771_v2  ;;  %1439 = vmatmul.mubr.msk.f32.vlgmr.msra.gmra.mxu1 %vm475_vm1, %v383_v27  ;;  %v389_v2 = vld [vmem:[%s2049_s4 + $0x8] sm:$0xff] }
 0x26f   : > { %1426 = vmatprep.mubr.msk.f32.mxu0 %vm475_vm1, %v1776_v3  ;;  %1441 = vmatprep.mubr.msk.f32.mxu1 %vm475_vm1, %v384_v29  ;;  %v399_v3 = vld [vmem:[%s2049_s4 + $0x58] sm:$0xff]  ;;  %v596_v17 = vadd.f32 %v1364_v49, %v389_v2 }
 0x270   : > { %v646_v22 = vadd.f32 %v1379_v60, %v399_v3 }
 0x272   : > { %1427 = vmatmul.mubr.msk.f32.gmra.mxu0 %vm475_vm1, %v1786_v7  ;;  %1442 = vmatmul.mubr.msk.f32.gmra.mxu1 %vm475_vm1, %v385_v35  ;;  %v388_v7 = vld [vmem:[%s2049_s4] sm:$0xff] }
 0x273   : > { %1429 = vmatprep.mubr.msk.f32.mxu0 %vm475_vm1, %v1792_v8  ;;  %1444 = vmatprep.mubr.msk.f32.mxu1 %vm475_vm1, %v386_v41  ;;  %v398_v8 = vld [vmem:[%s2049_s4 + $0x50] sm:$0xff]  ;;  %v591_v25 = vadd.f32 %v590_v50, %v388_v7  ;;  %v400_v35 = vld [vmem:[%s2049_s4 + $0x60] sm:$0xff] }
 0x274   : > { %v641_v26 = vadd.f32 %v640_v54, %v398_v8  ;;  %v651_v59 = vadd.f32 %v650_v62, %v400_v35 }
 0x276   : > { %1430 = vmatmul.mubr.msk.f32.gmra.mxu0 %vm475_vm1, %v1802_v11  ;;  %1445 = vmatmul.mubr.msk.f32.gmra.mxu1 %vm475_vm1, %v387_v42 }
 0x277   : > { %1432 = vmatprep.mubr.msk.f32.mxu0 %vm475_vm1, %v1808_v16 }
 0x27a   : > { %1433 = vmatmul.mubr.msk.f32.gmra.mxu0 %vm475_vm1, %v1818_v20  ;;  %v391_v20 = vld [vmem:[%s2049_s4 + $0x18] sm:$0xff] }
 0x27b   : > { %1435 = vmatprep.mubr.msk.f32.mxu0 %vm475_vm1, %v1824_v21  ;;  %v390_v21 = vld [vmem:[%s2049_s4 + $0x10] sm:$0xff]  ;;  %v606_v48 = vadd.f32 %v1367_v51, %v391_v20  ;;  %v393_v51 = vld [vmem:[%s2049_s4 + $0x28] sm:$0xff] }
 0x27c   : > { %v601_v49 = vadd.f32 %v600_v52, %v390_v21  ;;  %v403_v52 = vld [vmem:[%s2049_s4 + $0x78] sm:$0xff] }
 0x27e   : > { %1436 = vmatmul.mubr.msk.f32.gmra.mxu0 %vm475_vm1, %v1834_v23 }
 0x32e   : > { %v1425_v11 = vpop.f32.mrf.mxu0  ;;  %v1440_v16 = vpop.f32.mrf.mxu1 }
 0x32f   : > { %v812_v23 = vadd.f32 %v1425_v11, %v389_v2  ;;  %v862_v24 = vadd.f32 %v1440_v16, %v399_v3 }
 0x330   : > { %v806_v27 = vpop.f32.mrf.mxu0  ;;  %v856_v29 = vpop.f32.mrf.mxu1 }
 0x331   : > { %v886_v36 = vadd.f32 %v812_v23, %v596_v17  ;;  %v896_v41 = vadd.f32 %v862_v24, %v646_v22  ;;  %v807_v42 = vadd.f32 %v806_v27, %v388_v7  ;;  %v857_v47 = vadd.f32 %v856_v29, %v398_v8 }
 0x332   : > { %v1428_v60 = vpop.f32.mrf.mxu0  ;;  %v1443_v1 = vpop.f32.mrf.mxu1 }
 0x333   : > { %v1238_v50 = vmul.f32 -1.442695, %v886_v36  ;;  %v1248_v54 = vmul.f32 -1.442695, %v896_v41  ;;  %v885_v4 = vadd.f32 %v807_v42, %v591_v25  ;;  %v895_v9 = vadd.f32 %v857_v47, %v641_v26  ;;  %v392_v41 = vld [vmem:[%s2049_s4 + $0x20] sm:$0xff] }
 0x334   : > { %v822_v2 = vadd.f32 %v1428_v60, %v391_v20  ;;  %v872_v3 = vadd.f32 %v1443_v1, %v401_v30  ;;  %v816_v11 = vpop.f32.mrf.mxu0  ;;  %v866_v16 = vpop.f32.mrf.mxu1  ;;  %v616_v30 = vadd.f32 %v1875_v53, %v393_v51  ;;  %v611_v53 = vadd.f32 %v1877_v55, %v392_v41  ;;  %v394_v55 = vld [vmem:[%s2049_s4 + $0x30] sm:$0xff] }
 0x335   : > { %1462 = vpow2.f32 %v1238_v50  ;;  %v1237_v34 = vmul.f32 -1.442695, %v885_v4  ;;  %v1247_v17 = vmul.f32 -1.442695, %v895_v9  ;;  %v817_v22 = vadd.f32 %v816_v11, %v390_v21 }
 0x336   : > { %1464 = vpow2.f32 %v1248_v54  ;;  %v888_v7 = vadd.f32 %v822_v2, %v606_v48  ;;  %v898_v61 = vadd.f32 %v872_v3, %v656_v10  ;;  %v867_v62 = vadd.f32 %v866_v16, %v400_v35  ;;  %v1431_v8 = vpop.f32.mrf.mxu0  ;;  %v1446_v20 = vpop.f32.mrf.mxu1  ;;  %v397_v48 = vld [vmem:[%s2049_s4 + $0x48] sm:$0xff] }
 0x337   : > { %1466 = vpow2.f32 %v1237_v34  ;;  %v887_v23 = vadd.f32 %v817_v22, %v601_v49  ;;  %v832_v24 = vadd.f32 %v1431_v8, %v393_v51  ;;  %v882_v25 = vadd.f32 %v1446_v20, %v403_v52 }
 0x338   : > { %1468 = vpow2.f32 %v1247_v17  ;;  %v1240_v21 = vmul.f32 -1.442695, %v888_v7  ;;  %v1250_v26 = vmul.f32 -1.442695, %v898_v61  ;;  %v897_v27 = vadd.f32 %v867_v62, %v651_v59  ;;  %v826_v29 = vpop.f32.mrf.mxu0 }
 0x339   : > { %v1239_v36 = vmul.f32 -1.442695, %v887_v23  ;;  %v666_v35 = vadd.f32 %v1887_v63, %v403_v52  ;;  %v890_v34 = vadd.f32 %v832_v24, %v616_v30  ;;  %v827_v47 = vadd.f32 %v826_v29, %v392_v41  ;;  %v395_v63 = vld [vmem:[%s2049_s4 + $0x38] sm:$0xff] }
 0x33a   : > { %1470 = vpow2.f32 %v1240_v21  ;;  %v1434_v42 = vpop.f32.mrf.mxu0  ;;  %v1249_v49 = vmul.f32 -1.442695, %v897_v27  ;;  %v636_v54 = vadd.f32 %v1883_v58, %v397_v48  ;;  %v626_v16 = vadd.f32 %v1879_v56, %v395_v63  ;;  %v876_v27 = vpop.f32.mrf.mxu1 }
 0x33b   : > { %1472 = vpow2.f32 %v1250_v26  ;;  %v900_v60 = vadd.f32 %v882_v25, %v666_v35  ;;  %v1242_v4 = vmul.f32 -1.442695, %v890_v34  ;;  %v889_v9 = vadd.f32 %v827_v47, %v611_v53  ;;  %v396_v26 = vld [vmem:[%s2049_s4 + $0x40] sm:$0xff] }
 0x33c   : > { %v836_v1 = vpop.f32.mrf.mxu0  ;;  %1474 = vpow2.f32 %v1239_v36  ;;  %v842_v2 = vadd.f32 %v1434_v42, %v395_v63  ;;  %v621_v20 = vadd.f32 %v1881_v57, %v394_v55  ;;  %v402_v57 = vld [vmem:[%s2049_s4 + $0x70] sm:$0xff]  ;;  %v631_v34 = vadd.f32 %v1885_v28, %v396_v26 }
 0x33d   : > { %1476 = vpow2.f32 %v1249_v49  ;;  %v1252_v59 = vmul.f32 -1.442695, %v900_v60  ;;  %v1241_v51 = vmul.f32 -1.442695, %v889_v9  ;;  %v837_v61 = vadd.f32 %v836_v1, %v394_v55 }
 0x33e   : > { %v1437_v50 = vpop.f32.mrf.mxu0  ;;  %1478 = vpow2.f32 %v1242_v4  ;;  %v892_v7 = vadd.f32 %v842_v2, %v626_v16  ;;  %v877_v47 = vadd.f32 %v876_v27, %v402_v57  ;;  %v661_v60 = vadd.f32 %v1889_v0, %v402_v57 }
 0x33f   : > { %v852_v10 = vadd.f32 %v1437_v50, %v397_v48  ;;  %1480 = vpow2.f32 %v1252_v59  ;;  %v891_v30 = vadd.f32 %v837_v61, %v621_v20 }
 0x340   : > { %v846_v24 = vpop.f32.mrf.mxu0  ;;  %v1244_v29 = vmul.f32 -1.442695, %v892_v7  ;;  %v899_v50 = vadd.f32 %v877_v47, %v661_v60 }
 0x341   : > { %v894_v3 = vadd.f32 %v852_v10, %v636_v54  ;;  %v847_v41 = vadd.f32 %v846_v24, %v396_v26  ;;  %v1243_v48 = vmul.f32 -1.442695, %v891_v30 }
 0x342   : > { %v1463_v11 = vpop.eup %1462  ;;  %v1251_v28 = vmul.f32 -1.442695, %v899_v50 }
 0x343   : > { %v1465_v17 = vpop.eup %1464  ;;  %v950_v22 = vadd.f32 1.0, %v1463_v11  ;;  %v1246_v8 = vmul.f32 -1.442695, %v894_v3  ;;  %v893_v53 = vadd.f32 %v847_v41, %v631_v34 }
 0x344   : > { %v1467_v52 = vpop.eup %1466  ;;  %v960_v58 = vadd.f32 1.0, %v1465_v17 }
 0x345   : > { %v1469_v62 = vpop.eup %1468  ;;  %1482 = vrcp.f32 %v950_v22  ;;  %v949_v56 = vadd.f32 1.0, %v1467_v52  ;;  %v1245_v9 = vmul.f32 -1.442695, %v893_v53 }
 0x346   : > { %1484 = vrcp.f32 %v960_v58  ;;  %v959_v23 = vadd.f32 1.0, %v1469_v62 }
 0x347   : > { %v1471_v25 = vpop.eup %1470  ;;  %1486 = vpow2.f32 %v1241_v51 }
 0x348   : > { %v1473_v21 = vpop.eup %1472  ;;  %1488 = vrcp.f32 %v959_v23  ;;  %v952_v36 = vadd.f32 1.0, %v1471_v25 }
 0x349   : > { %1490 = vpow2.f32 %v1246_v8  ;;  %v1475_v35 = vpop.eup %1474  ;;  %v962_v42 = vadd.f32 1.0, %v1473_v21 }
 0x34a   : > { %1492 = vrcp.f32 %v949_v56  ;;  %v1477_v49 = vpop.eup %1476  ;;  %v951_v1 = vadd.f32 1.0, %v1475_v35 }
 0x34b   : > { %1494 = vpow2.f32 %v1244_v29  ;;  %v1479_v63 = vpop.eup %1478  ;;  %v961_v54 = vadd.f32 1.0, %v1477_v49 }
 0x34c   : > { %1496 = vrcp.f32 %v952_v36  ;;  %v1481_v4 = vpop.eup %1480  ;;  %v954_v3 = vadd.f32 1.0, %v1479_v63 }
 0x34d   : > { %1498 = vrcp.f32 %v962_v42  ;;  %v964_v55 = vadd.f32 1.0, %v1481_v4 }
 0x34e   : > { %1500 = vpow2.f32 %v1243_v48 }
 0x34f   : > { %1502 = vrcp.f32 %v951_v1 }
 0x350   : > { %1504 = vrcp.f32 %v961_v54 }
 0x351   : > { %1506 = vpow2.f32 %v1245_v9 }
 0x352   : > { %v1483_v10 = vpop.eup %1482  ;;  %1508 = vpow2.f32 %v1251_v28 }
 0x353   : > { %v1485_v59 = vpop.eup %1484  ;;  %1004 = vperm.xlu1 %1460, %v1483_v10   ;;  %1510 = vrcp.f32 %v954_v3 }
 0x354   : > { %v1487_v2 = vpop.eup %1486  ;;  %1054 = vperm.xlu0 %1461, %v1485_v59  }
 0x355   : > { %v1489_v0 = vpop.eup %1488  ;;  %v953_v51 = vadd.f32 1.0, %v1487_v2 }
 0x356   : > { %v1491_v11 = vpop.eup %1490 }
 0x357   : > { %v1493_v16 = vpop.eup %1492  ;;  %v958_v17 = vadd.f32 1.0, %v1491_v11  ;;  %1049 = vperm.xlu1 %1460, %v1489_v0  }
 0x358   : > { %999 = vperm.xlu0 %1461, %v1493_v16   ;;  %v1495_v22 = vpop.eup %1494 }
 0x359   : > { %1512 = vrcp.f32 %v958_v17  ;;  %v1497_v52 = vpop.eup %1496  ;;  %v956_v61 = vadd.f32 1.0, %v1495_v22  ;;  %v2053_v17 = vld [vmem:[#allocation2_spill] sm:$0xff]  ;;  %v1530_v22 = vld [vmem:[%s1595_s23 + $0x70] sm:$0xff] }
 0x35a   : > { %v1499_v58 = vpop.eup %1498  ;;  %1514 = vrcp.f32 %v964_v55 }
 0x35b   : > { %1014 = vperm.xlu1 %1460, %v1497_v52   ;;  %v1501_v7 = vpop.eup %1500  ;;  %1516 = vrcp.f32 %v953_v51  ;;  %v1531_v52 = vld [vmem:[%s1595_s23 + $0x78] sm:$0xff] }
 0x35c   : > { %1064 = vperm.xlu0 %1461, %v1499_v58   ;;  %v1503_v62 = vpop.eup %1502  ;;  %1518 = vrcp.f32 %v956_v61  ;;  %v955_v20 = vadd.f32 1.0, %v1501_v7  ;;  %v1532_v7 = vld [vmem:[%s1595_s23 + $0x60] sm:$0xff] }
 0x35d   : > { %v1505_v8 = vpop.eup %1504 }
 0x35e   : > { %v1507_v56 = vpop.eup %1506  ;;  %1520 = vrcp.f32 %v955_v20 }
 0x35f   : > { %1009 = vperm.xlu1 %1460, %v1503_v62   ;;  %v1509_v23 = vpop.eup %1508  ;;  %v957_v25 = vadd.f32 1.0, %v1507_v56  ;;  %v1533_v62 = vld [vmem:[%s1595_s23 + $0x68] sm:$0xff]  ;;  %v1534_v56 = vld [vmem:[%s1595_s23 + $0x80] sm:$0xff] }
 0x360   : > { %v1511_v24 = vpop.eup %1510  ;;  %v963_v27 = vadd.f32 1.0, %v1509_v23 }
 0x361   : > { %1522 = vrcp.f32 %v957_v25 }
 0x362   : > { %1524 = vrcp.f32 %v963_v27 }
 0x363   : > { %1059 = vperm.xlu1 %1460, %v1505_v8  }
 0x366   : > { %v1513_v21 = vpop.eup %1512 }
 0x367   : > { %1044 = vperm.xlu0 %1461, %v1513_v21   ;;  %1024 = vperm.xlu1 %1460, %v1511_v24   ;;  %v1515_v26 = vpop.eup %1514  ;;  %v1535_v24 = vld [vmem:[%s1595_s23 + $0x88] sm:$0xff] }
 0x368   : > { %v1517_v29 = vpop.eup %1516 }
 0x369   : > { %v1519_v30 = vpop.eup %1518 }
 0x36b   : > { %1074 = vperm.xlu0 %1461, %v1515_v26   ;;  %1019 = vperm.xlu1 %1460, %v1517_v29   ;;  %v1521_v36 = vpop.eup %1520  ;;  %v1536_v26 = vld [vmem:[%s1595_s23 + $0xe0] sm:$0xff]  ;;  %v1537_v29 = vld [vmem:[%s1595_s23 + $0xe8] sm:$0xff] }
 0x36e   : > { %v1523_v41 = vpop.eup %1522 }
 0x36f   : > { %1034 = vperm.xlu1 %1460, %v1519_v30   ;;  %v1525_v35 = vpop.eup %1524 }
 0x373   : > { %1029 = vperm.xlu1 %1460, %v1521_v36  }
 0x377   : > { %1039 = vperm.xlu1 %1460, %v1523_v41  }
 0x37b   : > { %1069 = vperm.xlu1 %1460, %v1525_v35  }
 0x3ce   : > { %v1005_v57 = vpop.permute.xlu1 %1004 }
 0x3cf   : > { %v1079_v42 = vmul.f32 %v1005_v57, %v1693_v43  ;;  %v1080_v34 = vmul.f32 %v1005_v57, %v1696_v44  ;;  %v1055_v47 = vpop.permute.xlu0 %1054 }
 0x3d0   : > { %v1099_v48 = vmul.f32 %v1055_v47, %v1630_v12  ;;  %v1100_v49 = vmul.f32 %v1055_v47, %v1633_v13 }
 0x3d1   : > { %1111 = vst [vmem:[%s1976_s6 + $0x10] sm:$0xff] %v1079_v42  ;;  %1112 = vst [vmem:[%s1976_s6 + $0x18] sm:$0xff] %v1080_v34 }
 0x3d2   : > { %1131 = vst [vmem:[%s1976_s6 + $0xb0] sm:$0xff] %v1099_v48  ;;  %1132 = vst [vmem:[%s1976_s6 + $0xb8] sm:$0xff] %v1100_v49  ;;  %v1050_v60 = vpop.permute.xlu1 %1049 }
 0x3d3   : > { %v1000_v1 = vpop.permute.xlu0 %999  ;;  %v1097_v43 = vmul.f32 %v1050_v60, %v1636_v14  ;;  %v1098_v44 = vmul.f32 %v1050_v60, %v1639_v15 }
 0x3d4   : > { %v1077_v53 = vmul.f32 %v1000_v1, %v1699_v45  ;;  %v1078_v12 = vmul.f32 %v1000_v1, %v1702_v46 }
 0x3d5   : > { %1129 = vst [vmem:[%s1976_s6 + $0xa0] sm:$0xff] %v1097_v43  ;;  %1130 = vst [vmem:[%s1976_s6 + $0xa8] sm:$0xff] %v1098_v44 }
 0x3d6   : > { %1109 = vst [vmem:[%s1976_s6] sm:$0xff] %v1077_v53  ;;  %1110 = vst [vmem:[%s1976_s6 + $0x8] sm:$0xff] %v1078_v12  ;;  %v1015_v13 = vpop.permute.xlu1 %1014 }
 0x3d7   : > { %v1065_v50 = vpop.permute.xlu0 %1064  ;;  %v1083_v63 = vmul.f32 %v1015_v13, %v1677_v37  ;;  %v1084_v14 = vmul.f32 %v1015_v13, %v1680_v38 }
 0x3d8   : > { %v1103_v15 = vmul.f32 %v1065_v50, %v1612_v5  ;;  %v1104_v45 = vmul.f32 %v1065_v50, %v1615_v6  ;;  %v1526_v5 = vld [vmem:[%s1595_s23 + $0xc0] sm:$0xff]  ;;  %v1527_v6 = vld [vmem:[%s1595_s23 + $0xc8] sm:$0xff] }
 0x3d9   : > { %1115 = vst [vmem:[%s1976_s6 + $0x30] sm:$0xff] %v1083_v63  ;;  %1116 = vst [vmem:[%s1976_s6 + $0x38] sm:$0xff] %v1084_v14 }
 0x3da   : > { %1135 = vst [vmem:[%s1976_s6 + $0xd0] sm:$0xff] %v1103_v15  ;;  %1136 = vst [vmem:[%s1976_s6 + $0xd8] sm:$0xff] %v1104_v45  ;;  %v1010_v46 = vpop.permute.xlu1 %1009 }
 0x3db   : > { %v1081_v54 = vmul.f32 %v1010_v46, %v1683_v39  ;;  %v1082_v4 = vmul.f32 %v1010_v46, %v1686_v40 }
 0x3dd   : > { %1113 = vst [vmem:[%s1976_s6 + $0x20] sm:$0xff] %v1081_v54  ;;  %1114 = vst [vmem:[%s1976_s6 + $0x28] sm:$0xff] %v1082_v4 }
 0x3de   : > { %v1060_v37 = vpop.permute.xlu1 %1059 }
 0x3df   : > { %v1101_v38 = vmul.f32 %v1526_v5, %v1060_v37  ;;  %v1102_v9 = vmul.f32 %v1527_v6, %v1060_v37 }
 0x3e1   : > { %1133 = vst [vmem:[%s1976_s6 + $0xc0] sm:$0xff] %v1101_v38  ;;  %1134 = vst [vmem:[%s1976_s6 + $0xc8] sm:$0xff] %v1102_v9 }
 0x3e2   : > { %v1045_v10 = vpop.permute.xlu0 %1044  ;;  %v1025_v59 = vpop.permute.xlu1 %1024 }
 0x3e3   : > { %v1095_v39 = vmul.f32 %v1045_v10, %v1646_v18  ;;  %v1096_v40 = vmul.f32 %v1045_v10, %v1649_v19  ;;  %v1087_v28 = vmul.f32 %v1025_v59, %v1661_v31  ;;  %v1088_v2 = vmul.f32 %v1025_v59, %v1664_v32  ;;  %v1528_v18 = vld [vmem:[%s1595_s23 + $0xf0] sm:$0xff]  ;;  %v1529_v19 = vld [vmem:[%s1595_s23 + $0xf8] sm:$0xff] }
 0x3e5   : > { %1127 = vst [vmem:[%s1976_s6 + $0x90] sm:$0xff] %v1095_v39  ;;  %1128 = vst [vmem:[%s1976_s6 + $0x98] sm:$0xff] %v1096_v40 }
 0x3e6   : > { %1119 = vst [vmem:[%s1976_s6 + $0x50] sm:$0xff] %v1087_v28  ;;  %1120 = vst [vmem:[%s1976_s6 + $0x58] sm:$0xff] %v1088_v2  ;;  %v1075_v3 = vpop.permute.xlu0 %1074  ;;  %v1020_v0 = vpop.permute.xlu1 %1019 }
 0x3e7   : > { %v1107_v11 = vmul.f32 %v1528_v18, %v1075_v3  ;;  %v1108_v16 = vmul.f32 %v1529_v19, %v1075_v3  ;;  %v1085_v31 = vmul.f32 %v1020_v0, %v1667_v33  ;;  %v1086_v32 = vmul.f32 %v1020_v0, %v2053_v17 }
 0x3e9   : > { %1139 = vst [vmem:[%s1976_s6 + $0xf0] sm:$0xff] %v1107_v11  ;;  %1140 = vst [vmem:[%s1976_s6 + $0xf8] sm:$0xff] %v1108_v16 }
 0x3ea   : > { %1117 = vst [vmem:[%s1976_s6 + $0x40] sm:$0xff] %v1085_v31  ;;  %1118 = vst [vmem:[%s1976_s6 + $0x48] sm:$0xff] %v1086_v32  ;;  %v1035_v55 = vpop.permute.xlu1 %1034 }
 0x3eb   : > { %v1091_v51 = vmul.f32 %v1530_v22, %v1035_v55  ;;  %v1092_v58 = vmul.f32 %v1531_v52, %v1035_v55 }
 0x3ed   : > { %1123 = vst [vmem:[%s1976_s6 + $0x70] sm:$0xff] %v1091_v51  ;;  %1124 = vst [vmem:[%s1976_s6 + $0x78] sm:$0xff] %v1092_v58 }
 0x3ee   : > { %v1030_v33 = vpop.permute.xlu1 %1029 }
 0x3ef   : > { %v1089_v61 = vmul.f32 %v1532_v7, %v1030_v33  ;;  %v1090_v8 = vmul.f32 %v1533_v62, %v1030_v33 }
 0x3f1   : > { %1121 = vst [vmem:[%s1976_s6 + $0x60] sm:$0xff] %v1089_v61  ;;  %1122 = vst [vmem:[%s1976_s6 + $0x68] sm:$0xff] %v1090_v8 }
 0x3f2   : > { %v1040_v20 = vpop.permute.xlu1 %1039 }
 0x3f3   : > { %v1093_v23 = vmul.f32 %v1534_v56, %v1040_v20  ;;  %v1094_v25 = vmul.f32 %v1535_v24, %v1040_v20 }
 0x3f5   : > { %1125 = vst [vmem:[%s1976_s6 + $0x80] sm:$0xff] %v1093_v23  ;;  %1126 = vst [vmem:[%s1976_s6 + $0x88] sm:$0xff] %v1094_v25 }
 0x3f6   : > { %v1070_v21 = vpop.permute.xlu1 %1069 }
 0x3f7   : > { %v1105_v27 = vmul.f32 %v1536_v26, %v1070_v21  ;;  %v1106_v30 = vmul.f32 %v1537_v29, %v1070_v21 }
 0x3f9   : > { %1137 = vst [vmem:[%s1976_s6 + $0xe0] sm:$0xff] %v1105_v27  ;;  %1138 = vst [vmem:[%s1976_s6 + $0xe8] sm:$0xff] %v1106_v30 }
 0x3fa PF: > { %s15_s18 = sadd.s32 1, %s1544_s18  }
 0x3fb   : > { %p12_p4 = scmp.ge.s32.totalorder %s15_s18, 4  }
 0x3fd   :  { %14 = sbr.rel (!%p12_p4) target bundleno = 1 (0x1), region = 70 }

</bundles_post_ra>
